<compile_context>
chip_gen: v7x
topology: tpu7x:2x2x1
jax: 0.10.0
libtpu: 0.0.40
codegen_flags: <defaults>
</compile_context>

<pallas_src>
import functools

import jax
import jax.numpy as jnp
from jax.experimental import pallas as pl
from jax.experimental.pallas import tpu as pltpu

_LANE = 128


def _make_kernel(M: int, t_tile: int, min_len: int, n_t: int, accumulate: bool):
    full_chunks = t_tile // _LANE
    tail = min_len - (n_t - 1) * t_tile            # valid time steps in the last tile
    last_chunks = pl.cdiv(tail, _LANE)             # chunks with any valid data
    boundary = tail - (last_chunks - 1) * _LANE    # valid lanes in the boundary chunk
    last_limit = boundary if boundary < _LANE else None
    tail_differs = tail < t_tile                   # last tile needs its own static path

    def chunk_sq(mel_ref, pred_ref, c, lane_limit):
        # mel chunk:  (M, 128), lane-contiguous slice of the channel-major tile
        a = mel_ref[:, c * _LANE:(c + 1) * _LANE].astype(jnp.float32)
        # pred chunk: (128, M) in its native time-major layout; transpose in the
        # source dtype (halves XLU/relayout traffic for bf16), then cast.
        p = jnp.transpose(
            pred_ref[c * _LANE:(c + 1) * _LANE, :], (1, 0)
        ).astype(jnp.float32)
        d = a - p
        sq = d * d
        if lane_limit is not None:
            # Select (not arithmetic masking): NaN/Inf in padded tails cannot propagate.
            col = jax.lax.broadcasted_iota(jnp.int32, sq.shape, 1)
            sq = jnp.where(col < lane_limit, sq, jnp.float32(0.0))
        return sq

    def fold(mel_ref, pred_ref, n_chunks, lane_limit):
        # Fused per-chunk subtract/square/accumulate keeps temporaries chunk-sized.
        # Rotating accumulators break the serial add dependency chain.
        n_acc = min(4, n_chunks)
        accs = [None] * n_acc
        for c in range(n_chunks):
            lim = lane_limit if c == n_chunks - 1 else None
            sq = chunk_sq(mel_ref, pred_ref, c, lim)
            k = c % n_acc
            accs[k] = sq if accs[k] is None else accs[k] + sq
        total = accs[0]
        for k in range(1, n_acc):
            total = total + accs[k]
        return total

    def kernel(mel_ref, pred_ref, out_ref):
        # mel_ref : (M, t_tile)  melspec tile, channel-major (time on lanes)
        # pred_ref: (t_tile, M)  prediction tile, native time-major layout
        # out_ref : (M, 128)     lane-dense partial squared-error sums
        t = pl.program_id(1)

        if accumulate:
            @pl.when(t == 0)
            def _():
                out_ref[...] = jnp.zeros_like(out_ref)

        def emit(partial):
            if accumulate:
                out_ref[...] += partial
            else:
                out_ref[...] = partial

        if not tail_differs:
            # min_len is a multiple of t_tile: every tile is full, zero masking work.
            emit(fold(mel_ref, pred_ref, full_chunks, None))
        elif n_t == 1:
            emit(fold(mel_ref, pred_ref, last_chunks, last_limit))
        else:
            is_last = t == (n_t - 1)

            @pl.when(jnp.logical_not(is_last))
            def _():
                emit(fold(mel_ref, pred_ref, full_chunks, None))

            @pl.when(is_last)
            def _():
                emit(fold(mel_ref, pred_ref, last_chunks, last_limit))

    return kernel


def _pick_t_tile(min_len: int, M: int, itemsize: int) -> int:
    t_full = pl.cdiv(min_len, _LANE) * _LANE
    # Per-time-step VMEM cost: double-buffered mel + pred inputs (2 bufs each) in the
    # source dtype, plus slack for chunk-sized f32 temporaries / compiler scratch.
    per_t = M * (4 * itemsize + 8)
    budget = 40 * 1024 * 1024          # headroom under v7x's 64 MiB physical VMEM
    cap = max(_LANE, (budget // per_t) // _LANE * _LANE)
    return int(min(t_full, 8192, cap))


def mel_loss(melspec: jax.Array, melspec_prediction: jax.Array, *,
             t_tile: int | None = None) -> jax.Array:
    """Pallas equivalent of MelLoss.forward.

    melspec:            (B, n_mels, T_mel)   channel-major
    melspec_prediction: (B, T_pred, n_mels)  time-major (transposed inside the loss)
    """
    B, M, T_mel = melspec.shape
    B2, T_pred, M2 = melspec_prediction.shape
    assert B == B2 and M == M2, "shape mismatch"

    min_len = min(T_mel, T_pred)       # static under jit
    assert min_len > 0, "empty time axis"

    itemsize = jnp.dtype(melspec.dtype).itemsize
    if t_tile is None:
        t_tile = _pick_t_tile(min_len, M, itemsize)
    assert t_tile % _LANE == 0
    n_t = pl.cdiv(min_len, t_tile)

    # In-kernel accumulation over t (output resident, t "arbitrary") unless it would
    # starve v7x's two TensorCores of parallel work (single / small odd batch), or the
    # grid has only one time step anyway.
    accumulate = n_t > 1 and (B % 2 == 0 or B >= 8)

    if accumulate:
        out_shape = jax.ShapeDtypeStruct((B, M, _LANE), jnp.float32)
        out_spec = pl.BlockSpec((None, M, _LANE), lambda b, t: (b, 0, 0))
        dims = ("parallel", "arbitrary")
        out_bytes = B * M * _LANE * 4
    else:
        out_shape = jax.ShapeDtypeStruct((B, n_t, M, _LANE), jnp.float32)
        out_spec = pl.BlockSpec((None, None, M, _LANE), lambda b, t: (b, t, 0, 0))
        dims = ("parallel", "parallel")
        out_bytes = B * n_t * M * _LANE * 4

    n_valid = B * M * min_len
    cost = pl.CostEstimate(
        flops=3 * n_valid,
        transcendentals=0,
        bytes_accessed=2 * n_valid * itemsize + out_bytes,
    )

    partials = pl.pallas_call(
        _make_kernel(M, t_tile, min_len, n_t, accumulate),
        out_shape=out_shape,
        grid_spec=pltpu.PrefetchScalarGridSpec(
            num_scalar_prefetch=0,
            grid=(B, n_t),
            in_specs=[
                # melspec in its native (B, M, T_mel) layout
                pl.BlockSpec((None, M, t_tile), lambda b, t: (b, 0, t)),
                # prediction in its native (B, T_pred, M) layout -- no XLA transpose
                pl.BlockSpec((None, t_tile, M), lambda b, t: (b, t, 0)),
            ],
            out_specs=out_spec,
        ),
        compiler_params=pltpu.CompilerParams(
            dimension_semantics=dims,
            vmem_limit_bytes=48 * 1024 * 1024,
        ),
        cost_estimate=cost,
    )(melspec, melspec_prediction)

    total = jnp.sum(partials)
    return (total / jnp.float32(n_valid)).astype(melspec.dtype)


if __name__ == "__main__":
    key = jax.random.PRNGKey(0)

    def ref_loss(mel, pred, dtype):
        ml = min(mel.shape[-1], pred.shape[-2])
        a = mel[:, :, :ml].astype(jnp.float32)
        b = jnp.swapaxes(pred, -1, -2)[:, :, :ml].astype(jnp.float32)
        return jnp.mean((a - b) ** 2).astype(dtype)

    # (B, n_mels, T_mel, T_pred, dtype, forced t_tile)
    cases = [
        (2, 8, 16, 12, jnp.float32, None),    # single tile, tail mask inside the chunk
        (3, 8, 300, 260, jnp.float32, 128),   # odd B -> partial-write scheme, n_t=3, tail=4
        (4, 8, 260, 300, jnp.bfloat16, 128),  # even B -> in-kernel t accumulation, bf16
    ]
    for i, (B, M, T_mel, T_pred, dtype, tt) in enumerate(cases):
        k1, k2 = jax.random.split(jax.random.fold_in(key, i))
        mel = jax.random.normal(k1, (B, M, T_mel), dtype=jnp.float32).astype(dtype)
        pred = jax.random.normal(k2, (B, T_pred, M), dtype=jnp.float32).astype(dtype)

        got = jax.jit(functools.partial(mel_loss, t_tile=tt))(mel, pred)
        jax.block_until_ready(got)

        want = ref_loss(mel, pred, dtype)
        tol = 1e-5 if dtype == jnp.float32 else 2e-2
        assert jnp.allclose(got.astype(jnp.float32), want.astype(jnp.float32),
                            rtol=tol, atol=tol), (i, got, want)

    print("KERNEL_OK")
</pallas_src>

<mosaic_0001>
module attributes {stable_mosaic.version = 11 : i64} {
  func.func @kernel(%arg0: i32, %arg1: i32, %arg2: memref<1x8x128xf32, #tpu.memory_space<vmem>>, %arg3: memref<1x128x8xf32, #tpu.memory_space<vmem>>, %arg4: memref<1x1x8x128xf32, #tpu.memory_space<vmem>>) attributes {dimension_semantics = [#tpu.dimension_semantics<parallel>, #tpu.dimension_semantics<parallel>], iteration_bounds = array<i64: 2, 1>, scalar_prefetch = 0 : i64, scratch_operands = 0 : i64, tpu.core_type = #tpu.core_type<tc>, window_params = [{transform_indices = @transform_0, window_bounds = array<i64: 1, 8, 128>}, {transform_indices = @transform_1, window_bounds = array<i64: 1, 128, 8>}, {transform_indices = @transform_2, window_bounds = array<i64: 1, 1, 8, 128>}]} {
    %c0 = arith.constant 0 : index
    %c0_0 = arith.constant 0 : index
    %c0_1 = arith.constant 0 : index
    %0 = vector.load %arg2[%c0, %c0_0, %c0_1] : memref<1x8x128xf32, #tpu.memory_space<vmem>>, vector<1x8x128xf32>
    %1 = vector.shape_cast %0 : vector<1x8x128xf32> to vector<8x128xf32>
    %c0_2 = arith.constant 0 : index
    %c0_3 = arith.constant 0 : index
    %c0_4 = arith.constant 0 : index
    %2 = vector.load %arg3[%c0_2, %c0_3, %c0_4] : memref<1x128x8xf32, #tpu.memory_space<vmem>>, vector<1x128x8xf32>
    %3 = vector.shape_cast %2 : vector<1x128x8xf32> to vector<128x8xf32>
    %4 = tpu.transpose %3, [1, 0] : vector<128x8xf32> -> vector<8x128xf32>
    %5 = arith.subf %1, %4 : vector<8x128xf32>
    %6 = arith.mulf %5, %5 : vector<8x128xf32>
    %7 = tpu.iota {dimensions = array<i32: 1>} : vector<8x128xi32>
    %c12_i32 = arith.constant 12 : i32
    %8 = vector.broadcast %c12_i32 : i32 to vector<8x128xi32>
    %9 = arith.cmpi slt, %7, %8 : vector<8x128xi32>
    %cst = arith.constant 0.000000e+00 : f32
    %10 = vector.broadcast %cst : f32 to vector<8x128xf32>
    %11 = arith.select %9, %6, %10 : vector<8x128xi1>, vector<8x128xf32>
    %c0_5 = arith.constant 0 : index
    %c0_6 = arith.constant 0 : index
    %c0_7 = arith.constant 0 : index
    %c0_8 = arith.constant 0 : index
    %12 = vector.load %arg4[%c0_5, %c0_6, %c0_7, %c0_8] : memref<1x1x8x128xf32, #tpu.memory_space<vmem>>, vector<1x1x8x128xf32>
    %13 = vector.shape_cast %12 : vector<1x1x8x128xf32> to vector<8x128xf32>
    %14 = vector.shape_cast %11 : vector<8x128xf32> to vector<1x1x8x128xf32>
    tpu.vector_store %arg4[%c0_5, %c0_6, %c0_7, %c0_8], %14 {strides = array<i32>} : memref<1x1x8x128xf32, #tpu.memory_space<vmem>>, vector<1x1x8x128xf32>,
    return
  }
  func.func @transform_0(%arg0: i32, %arg1: i32) -> (i32, i32, i32) {
    %c0_i32 = arith.constant 0 : i32
    %c0_i32_0 = arith.constant 0 : i32
    return %arg0, %c0_i32, %arg1 : i32, i32, i32
  }
  func.func @transform_1(%arg0: i32, %arg1: i32) -> (i32, i32, i32) {
    %c0_i32 = arith.constant 0 : i32
    %c0_i32_0 = arith.constant 0 : i32
    return %arg0, %arg1, %c0_i32 : i32, i32, i32
  }
  func.func @transform_2(%arg0: i32, %arg1: i32) -> (i32, i32, i32, i32) {
    %c0_i32 = arith.constant 0 : i32
    %c0_i32_0 = arith.constant 0 : i32
    %c0_i32_1 = arith.constant 0 : i32
    return %arg0, %arg1, %c0_i32, %c0_i32_0 : i32, i32, i32, i32
  }
}

</mosaic_0001>

<bundles_post_ra>
// kernel: mel_loss.1
= control target key start
LH: loop header
LB: loop body
LE: loop exit
PB: predicated region body
PF: predicated region fallthrough
CT: control target
= control target key end

     0   :  { %s439_s9 = smov 0   ;;  %s441_s10 = smov 0   ;;  %s497_s0 = inlined_call_operand.vmem [shape: f32[2,8,16], index: 0, kind: input, shape index: {}]   ;;  %s498_s1 = inlined_call_operand.vmem [shape: f32[2,12,8], index: 1, kind: input, shape index: {}]   ;;  %s499_s2 = inlined_call_operand.vmem [shape: f32[2,1,8,128], index: 2, kind: output, shape index: {}]  }
   0x1   :  { %s443_s11 = smov 0  }
   0x2 LB: > { %s24_s12 = sadd.s32 1, %s418_s10  ;;  %p368_p0 = scmp.ge.s32.totalorder %s422_s11, 1  ;;  %s422_s11 = sphi %s443_s11, %s12_s11   ;;  %s418_s10 = sphi %s441_s10, %s501_s10   ;;  %s414_s9 = sphi %s439_s9, %s500_s9  }
   0x3   : > { %p26_p1 = scmp.ge.s32.totalorder %s24_s12, 2  ;;  %p151_p2 = scmp.lt.s32.totalorder %s422_s11, 3 }
   0x5   : > { %s503_s12 = smov (%p26_p1, %s24_s12), 0  ;;  %p152_p3 = pnand %p368_p0, %p151_p2 }
   0x6   : > { %p188_p4 = scmp.lt.s32.totalorder (!%p152_p3), %s414_s9, 1  ;;  %v267_v16 = vlaneseq (!%p152_p3) }
   0x7   : > { %155 = sbr.rel (%p152_p3) target bundleno = 153 (0x99), region = 28 }
   0x8   : > { %v268_v18 = vand.u32 (!%p152_p3), 127, %v267_v16 }
   0xa   : > { %vm269_vm0 = vcmp.lt.s32.totalorder (!%p152_p3), %v268_v18, 12 }
   0xe   : > { %s505_s9 = smov (!%p188_p4, %s414_s9), 1 }
   0xf   : > { %s375_s13 = sshll.u32 %s505_s9, 4  ;;  %s369_s17 = sshll.u32 %s505_s9, 3 }
  0x10   : > { %s463_s16 = scalar_lea.vmem %s498_s1, %s375_s13  ;;  %s194_s20 = scalar_lea.vmem %s497_s0, %s369_s17 }
  0x11   : > { %v217_v0 = vld [vmem:[%s463_s16] sm:$0xff]  ;;  %v218_v1 = vld [vmem:[%s463_s16 + $0x8] sm:$0xff]  ;;  %v219_v2 = vld [vmem:[%s463_s16 + $0x10] sm:$0xff]  ;;  %s215_s23 = scalar_lea.vmem %s499_s2, %s369_s17 }
  0x12   : > { %233 = vxpose.xlu0.b32.start [1/16] (narrow) %v217_v0, 8  ;;  %v220_v3 = vld [vmem:[%s463_s16 + $0x18] sm:$0xff]  ;;  %v221_v4 = vld [vmem:[%s463_s16 + $0x20] sm:$0xff]  ;;  %v222_v5 = vld [vmem:[%s463_s16 + $0x28] sm:$0xff] }
  0x13   : > { %v223_v6 = vld [vmem:[%s463_s16 + $0x30] sm:$0xff]  ;;  %v224_v7 = vld [vmem:[%s463_s16 + $0x38] sm:$0xff]  ;;  %v225_v8 = vld [vmem:[%s463_s16 + $0x40] sm:$0xff] }
  0x14   : > { %v226_v9 = vld [vmem:[%s463_s16 + $0x48] sm:$0xff]  ;;  %v227_v10 = vld [vmem:[%s463_s16 + $0x50] sm:$0xff]  ;;  %v228_v11 = vld [vmem:[%s463_s16 + $0x58] sm:$0xff] }
  0x15   : > { %v229_v12 = vld [vmem:[%s463_s16 + $0x60] sm:$0xff]  ;;  %v230_v13 = vld [vmem:[%s463_s16 + $0x68] sm:$0xff]  ;;  %v231_v14 = vld [vmem:[%s463_s16 + $0x70] sm:$0xff] }
  0x16   : > { %234 = vxpose.xlu0.b32.cont [2/16] (narrow) %v218_v1, 8  ;;  %v232_v15 = vld [vmem:[%s463_s16 + $0x78] sm:$0xff]  ;;  %v216_v17 = vld [vmem:[%s194_s20] sm:$0xff] }
  0x1a   : > { %235 = vxpose.xlu0.b32.cont [3/16] (narrow) %v219_v2, 8 }
  0x1e   : > { %236 = vxpose.xlu0.b32.cont [4/16] (narrow) %v220_v3, 8 }
  0x22   : > { %237 = vxpose.xlu0.b32.cont [5/16] (narrow) %v221_v4, 8 }
  0x26   : > { %238 = vxpose.xlu0.b32.cont [6/16] (narrow) %v222_v5, 8 }
  0x2a   : > { %239 = vxpose.xlu0.b32.cont [7/16] (narrow) %v223_v6, 8 }
  0x2e   : > { %240 = vxpose.xlu0.b32.cont [8/16] (narrow) %v224_v7, 8 }
  0x32   : > { %241 = vxpose.xlu0.b32.cont [9/16] (narrow) %v225_v8, 8 }
  0x36   : > { %242 = vxpose.xlu0.b32.cont [10/16] (narrow) %v226_v9, 8 }
  0x3a   : > { %243 = vxpose.xlu0.b32.cont [11/16] (narrow) %v227_v10, 8 }
  0x3e   : > { %244 = vxpose.xlu0.b32.cont [12/16] (narrow) %v228_v11, 8 }
  0x42   : > { %245 = vxpose.xlu0.b32.cont [13/16] (narrow) %v229_v12, 8 }
  0x46   : > { %246 = vxpose.xlu0.b32.cont [14/16] (narrow) %v230_v13, 8 }
  0x4a   : > { %247 = vxpose.xlu0.b32.cont [15/16] (narrow) %v231_v14, 8 }
  0x4e   : > { %248 = vxpose.xlu0.b32.end [16/16] (narrow) %v232_v15, 8 }
  0x92   : > { %v249_v19 = vpop.trf.xlu0 }
  0x93   : > { %v265_v20 = vsub.f32 %v216_v17, %v249_v19 }
  0x95   : > { %v266_v21 = vmul.f32 %v265_v20, %v265_v20 }
  0x97   : > { %v270_v22 = vsel %vm269_vm0, %v266_v21, 0.0 }
  0x98   : > { %271 = vst [vmem:[%s215_s23] sm:$0xff] %v270_v22 }
  0x99 PF: > { %s12_s11 = sadd.s32 1, %s422_s11   ;;  %s500_s9 = smov %s418_s10 }
  0x9a   : > { %p9_p5 = scmp.ge.s32.totalorder %s12_s11, 4   ;;  %s501_s10 = smov %s503_s12 }
  0x9c   :  { %11 = sbr.rel (!%p9_p5) target bundleno = 2 (0x2), region = 61 }

</bundles_post_ra>
